<compile_context>
chip_gen: v7x
topology: tpu7x:2x2x1
jax: 0.10.0
libtpu: 0.0.40
codegen_flags: <defaults>
</compile_context>

<pallas_src>
import functools
import math

import jax
import jax.numpy as jnp
from jax import lax
from jax.experimental import pallas as pl
from jax.experimental.pallas import tpu as pltpu


def _layernorm(z, gamma, beta, eps=1e-5):
    # gamma/beta are (1, D); elementwise math stays f32.
    mu = jnp.mean(z, axis=-1, keepdims=True)
    var = jnp.mean((z - mu) ** 2, axis=-1, keepdims=True)
    return (z - mu) * lax.rsqrt(var + eps) * gamma + beta


def encoder_layer_kernel(
    x_ref, mask_ref,
    ln1_g_ref, ln1_b_ref,
    wqkv_ref, bqkv_ref, wo_ref, bo_ref,
    ln2_g_ref, ln2_b_ref,
    w1_ref, b1_ref, w2_ref, b2_ref,
    out_ref,
    *, n_head: int, mxu_dtype, approx_recip: bool,
):
    x = x_ref[...]                          # (S, D) f32 — one full sequence
    S, D = x.shape
    hd = D // n_head
    # PyTorch does masked_fill(-1e9) BEFORE dividing by sqrt(hd); with the
    # scale folded into wq/bq, the equivalent fill value is -1e9/sqrt(hd).
    fill = jnp.float32(-1e9 / math.sqrt(hd))

    # ---- sublayer 1: pre-norm self-attention + residual ----------------------
    x_ln = _layernorm(x, ln1_g_ref[...], ln1_b_ref[...])

    # One fused QKV matmul (Q columns pre-scaled), f32 accumulation on the MXU.
    qkv = jnp.dot(x_ln.astype(mxu_dtype), wqkv_ref[...],
                  preferred_element_type=jnp.float32) + bqkv_ref[...]

    # Hoisted mask broadcast: built ONCE, reused by every head.
    masked = jnp.broadcast_to(mask_ref[0] > 0.5, (S, S))   # True == key masked

    wo = wo_ref[...]

    def head_slices(h):
        lo = h * hd
        qh = qkv[:, lo:lo + hd]
        kh = qkv[:, D + lo:D + lo + hd]
        vh = qkv[:, 2 * D + lo:2 * D + lo + hd]
        return qh, kh, vh

    def head_attention(qh, kh, vh):
        # scores = q @ k^T: contract the last dim of both (no transpose op).
        s = lax.dot_general(qh.astype(mxu_dtype), kh.astype(mxu_dtype),
                            dimension_numbers=(((1,), (1,)), ((), ())),
                            preferred_element_type=jnp.float32)
        s = jnp.where(masked, fill, s)                      # masked_fill
        s = s - jnp.max(s, axis=-1, keepdims=True)
        p = jnp.exp(s)
        p = p * pl.reciprocal(jnp.sum(p, axis=-1, keepdims=True),
                              approx=approx_recip)
        return jnp.dot(p.astype(mxu_dtype), vh.astype(mxu_dtype),
                       preferred_element_type=jnp.float32)  # (S, hd)

    if hd % 128 == 0:
        # Lane-aligned heads (realistic models): concat per-head contexts
        # (lane-dense) and run ONE full-contraction (S,D)@(D,D) matmul vs wo.
        ctx = jnp.concatenate(
            [head_attention(*head_slices(h)) for h in range(n_head)], axis=-1)
        attn = jnp.dot(ctx.astype(mxu_dtype), wo,
                       preferred_element_type=jnp.float32)
    else:
        # hd < 128 (toy shape): accumulate each head through its slice of wo
        # (sum_h ctx_h @ wo_h == concat(ctx_h) @ wo) — avoids a lane-minor
        # concat of sub-128 slices.
        attn = None
        for h in range(n_head):
            ctx_h = head_attention(*head_slices(h))
            contrib = jnp.dot(ctx_h.astype(mxu_dtype),
                              wo[h * hd:(h + 1) * hd, :],
                              preferred_element_type=jnp.float32)
            attn = contrib if attn is None else attn + contrib

    x1 = x + attn + bo_ref[...]             # dropout == identity (eval mode)

    # ---- sublayer 2: pre-norm position-wise FFN + residual --------------------
    x_ln2 = _layernorm(x1, ln2_g_ref[...], ln2_b_ref[...])
    h1 = jnp.dot(x_ln2.astype(mxu_dtype), w1_ref[...],
                 preferred_element_type=jnp.float32) + b1_ref[...]
    h1 = jnp.maximum(h1, 0.0)
    ffn = jnp.dot(h1.astype(mxu_dtype), w2_ref[...],
                  preferred_element_type=jnp.float32) + b2_ref[...]

    out_ref[...] = x1 + ffn


def encoder_layer(x, src_mask, params, n_head, *, mxu_dtype=jnp.bfloat16):
    """x: (B, S, D) f32, src_mask: (B, S) bool (True == masked). -> (B, S, D)."""
    B, S, D = x.shape
    hd = D // n_head
    scale = 1.0 / math.sqrt(hd)

    # Host-side, one-time parameter transforms:
    #   * fuse Q/K/V weights into one (D, 3D) matrix, fold scale into Q,
    #   * cast matmul weights to the MXU operand dtype (accumulation stays f32
    #     via preferred_element_type inside the kernel).
    w_qkv = jnp.concatenate(
        [params["wq"] * scale, params["wk"], params["wv"]], axis=1).astype(mxu_dtype)
    b_qkv = jnp.concatenate(
        [params["bq"] * scale, params["bk"], params["bv"]]).reshape(1, -1)
    wo = params["wo"].astype(mxu_dtype)
    w1 = params["w1"].astype(mxu_dtype)
    w2 = params["w2"].astype(mxu_dtype)

    x2 = x.reshape(B * S, D).astype(jnp.float32)
    mask3 = src_mask.astype(jnp.float32).reshape(B, 1, S)   # 1.0 == masked

    row = lambda p: p.reshape(1, -1).astype(jnp.float32)

    args = (
        x2, mask3,
        row(params["ln1_g"]), row(params["ln1_b"]),
        w_qkv, b_qkv,
        wo, row(params["bo"]),
        row(params["ln2_g"]), row(params["ln2_b"]),
        w1, row(params["b1"]),
        w2, row(params["b2"]),
    )

    def resident(arr):
        # Weights/biases: full-array block with a CONSTANT block index — DMA'd
        # once, VMEM-resident across every grid step.
        nd = arr.ndim
        return pl.BlockSpec(arr.shape, lambda b, _nd=nd: (0,) * _nd)

    in_specs = [
        pl.BlockSpec((S, D), lambda b: (b, 0)),         # x: one sequence / step
        pl.BlockSpec((1, 1, S), lambda b: (b, 0, 0)),   # that sequence's mask row
    ] + [resident(a) for a in args[2:]]

    kernel = functools.partial(
        encoder_layer_kernel, n_head=n_head, mxu_dtype=mxu_dtype,
        approx_recip=(mxu_dtype != jnp.float32))

    out2 = pl.pallas_call(
        kernel,
        out_shape=jax.ShapeDtypeStruct((B * S, D), jnp.float32),
        grid_spec=pltpu.PrefetchScalarGridSpec(
            num_scalar_prefetch=0,
            grid=(B,),                                   # row tile = 1 sequence
            in_specs=in_specs,
            out_specs=pl.BlockSpec((S, D), lambda b: (b, 0)),
        ),
        compiler_params=pltpu.CompilerParams(
            dimension_semantics=("parallel",),           # shard steps across TCs
            vmem_limit_bytes=32 * 1024 * 1024,
        ),
    )(*args)
    return out2.reshape(B, S, D)


# ----------------------------- pure-JAX reference -----------------------------
def encoder_layer_ref(x, src_mask, params, n_head):
    B, S, D = x.shape
    hd = D // n_head

    def ln(z, g, b, eps=1e-5):
        mu = z.mean(-1, keepdims=True)
        var = ((z - mu) ** 2).mean(-1, keepdims=True)
        return (z - mu) / jnp.sqrt(var + eps) * g + b

    x_ln = ln(x, params["ln1_g"], params["ln1_b"])
    q = x_ln @ params["wq"] + params["bq"]
    k = x_ln @ params["wk"] + params["bk"]
    v = x_ln @ params["wv"] + params["bv"]
    q = q.reshape(B, S, n_head, hd).transpose(0, 2, 1, 3)
    k = k.reshape(B, S, n_head, hd).transpose(0, 2, 1, 3)
    v = v.reshape(B, S, n_head, hd).transpose(0, 2, 1, 3)
    scores = jnp.einsum("bhqd,bhkd->bhqk", q, k)
    m = src_mask[:, None, None, :]
    scores = jnp.where(m, -1e9, scores)
    attn = jax.nn.softmax(scores / math.sqrt(hd), axis=-1)
    ctx = jnp.einsum("bhqk,bhkd->bhqd", attn, v).transpose(0, 2, 1, 3).reshape(B, S, D)
    x1 = x + (ctx @ params["wo"] + params["bo"])
    x_ln2 = ln(x1, params["ln2_g"], params["ln2_b"])
    h = jax.nn.relu(x_ln2 @ params["w1"] + params["b1"])
    return x1 + (h @ params["w2"] + params["b2"])


if __name__ == "__main__":
    B, S, D, H = 2, 8, 32, 4
    key = jax.random.PRNGKey(0)
    ks = jax.random.split(key, 14)

    def w(k, shape):
        return jax.random.normal(k, shape, dtype=jnp.float32) * 0.02

    params = {
        "ln1_g": jnp.ones((D,), jnp.float32),
        "ln1_b": jnp.zeros((D,), jnp.float32),
        "wq": w(ks[0], (D, D)), "bq": w(ks[1], (D,)),
        "wk": w(ks[2], (D, D)), "bk": w(ks[3], (D,)),
        "wv": w(ks[4], (D, D)), "bv": w(ks[5], (D,)),
        "wo": w(ks[6], (D, D)), "bo": w(ks[7], (D,)),
        "ln2_g": jnp.ones((D,), jnp.float32),
        "ln2_b": jnp.zeros((D,), jnp.float32),
        "w1": w(ks[8], (D, 4 * D)), "b1": w(ks[9], (4 * D,)),
        "w2": w(ks[10], (4 * D, D)), "b2": w(ks[11], (D,)),
    }

    x = jax.random.normal(ks[12], (B, S, D), dtype=jnp.float32)
    # mask: True == key position is masked out
    src_mask = jnp.zeros((B, S), dtype=bool).at[1, -2:].set(True)

    ref = encoder_layer_ref(x, src_mask, params, n_head=H)

    # Validation path: f32 MXU operands, exact softmax reciprocal.
    out_f32 = jax.block_until_ready(
        encoder_layer(x, src_mask, params, n_head=H, mxu_dtype=jnp.float32))
    assert out_f32.shape == (B, S, D)
    assert jnp.allclose(out_f32, ref, atol=1e-3, rtol=1e-3), \
        "f32 mismatch vs JAX reference"

    # Performance path: bf16 MXU operands (f32 accumulation), approx reciprocal.
    out_bf16 = jax.block_until_ready(
        encoder_layer(x, src_mask, params, n_head=H, mxu_dtype=jnp.bfloat16))
    assert out_bf16.shape == (B, S, D)
    assert jnp.allclose(out_bf16, ref, atol=3e-2, rtol=3e-2), \
        "bf16 mismatch vs JAX reference"

    print("KERNEL_OK")
</pallas_src>

<mosaic_0001>
module attributes {stable_mosaic.version = 11 : i64} {
  func.func @encoder_layer_kernel(%arg0: i32, %arg1: memref<8x32xf32, #tpu.memory_space<vmem>>, %arg2: memref<1x1x8xf32, #tpu.memory_space<vmem>>, %arg3: memref<1x32xf32, #tpu.memory_space<vmem>>, %arg4: memref<1x32xf32, #tpu.memory_space<vmem>>, %arg5: memref<32x96xf32, #tpu.memory_space<vmem>>, %arg6: memref<1x96xf32, #tpu.memory_space<vmem>>, %arg7: memref<32x32xf32, #tpu.memory_space<vmem>>, %arg8: memref<1x32xf32, #tpu.memory_space<vmem>>, %arg9: memref<1x32xf32, #tpu.memory_space<vmem>>, %arg10: memref<1x32xf32, #tpu.memory_space<vmem>>, %arg11: memref<32x128xf32, #tpu.memory_space<vmem>>, %arg12: memref<1x128xf32, #tpu.memory_space<vmem>>, %arg13: memref<128x32xf32, #tpu.memory_space<vmem>>, %arg14: memref<1x32xf32, #tpu.memory_space<vmem>>, %arg15: memref<8x32xf32, #tpu.memory_space<vmem>>) attributes {dimension_semantics = [#tpu.dimension_semantics<parallel>], iteration_bounds = array<i64: 2>, scalar_prefetch = 0 : i64, scratch_operands = 0 : i64, tpu.core_type = #tpu.core_type<tc>, window_params = [{transform_indices = @transform_0, window_bounds = array<i64: 8, 32>}, {transform_indices = @transform_1, window_bounds = array<i64: 1, 1, 8>}, {pipeline_mode = #tpu.pipeline_mode<synchronous>, transform_indices = @transform_2, window_bounds = array<i64: 1, 32>}, {pipeline_mode = #tpu.pipeline_mode<synchronous>, transform_indices = @transform_3, window_bounds = array<i64: 1, 32>}, {pipeline_mode = #tpu.pipeline_mode<synchronous>, transform_indices = @transform_4, window_bounds = array<i64: 32, 96>}, {pipeline_mode = #tpu.pipeline_mode<synchronous>, transform_indices = @transform_5, window_bounds = array<i64: 1, 96>}, {pipeline_mode = #tpu.pipeline_mode<synchronous>, transform_indices = @transform_6, window_bounds = array<i64: 32, 32>}, {pipeline_mode = #tpu.pipeline_mode<synchronous>, transform_indices = @transform_7, window_bounds = array<i64: 1, 32>}, {pipeline_mode = #tpu.pipeline_mode<synchronous>, transform_indices = @transform_8, window_bounds = array<i64: 1, 32>}, {pipeline_mode = #tpu.pipeline_mode<synchronous>, transform_indices = @transform_9, window_bounds = array<i64: 1, 32>}, {pipeline_mode = #tpu.pipeline_mode<synchronous>, transform_indices = @transform_10, window_bounds = array<i64: 32, 128>}, {pipeline_mode = #tpu.pipeline_mode<synchronous>, transform_indices = @transform_11, window_bounds = array<i64: 1, 128>}, {pipeline_mode = #tpu.pipeline_mode<synchronous>, transform_indices = @transform_12, window_bounds = array<i64: 128, 32>}, {pipeline_mode = #tpu.pipeline_mode<synchronous>, transform_indices = @transform_13, window_bounds = array<i64: 1, 32>}, {transform_indices = @transform_14, window_bounds = array<i64: 8, 32>}]} {
    %c0 = arith.constant 0 : index
    %c0_0 = arith.constant 0 : index
    %0 = vector.load %arg1[%c0, %c0_0] : memref<8x32xf32, #tpu.memory_space<vmem>>, vector<8x32xf32>
    %c0_1 = arith.constant 0 : index
    %c0_2 = arith.constant 0 : index
    %1 = vector.load %arg3[%c0_1, %c0_2] : memref<1x32xf32, #tpu.memory_space<vmem>>, vector<1x32xf32>
    %c0_3 = arith.constant 0 : index
    %c0_4 = arith.constant 0 : index
    %2 = vector.load %arg4[%c0_3, %c0_4] : memref<1x32xf32, #tpu.memory_space<vmem>>, vector<1x32xf32>
    %cst = arith.constant dense<0.000000e+00> : vector<8xf32>
    %3 = vector.multi_reduction <add>, %0, %cst [1] : vector<8x32xf32> to vector<8xf32>
    %4 = vector.shape_cast %3 : vector<8xf32> to vector<8x1xf32>
    %cst_5 = arith.constant 3.200000e+01 : f32
    %5 = vector.broadcast %cst_5 : f32 to vector<8x1xf32>
    %6 = arith.divf %4, %5 : vector<8x1xf32>
    %7 = vector.broadcast %6 : vector<8x1xf32> to vector<8x32xf32>
    %8 = arith.subf %0, %7 : vector<8x32xf32>
    %9 = arith.mulf %8, %8 : vector<8x32xf32>
    %cst_6 = arith.constant dense<0.000000e+00> : vector<8xf32>
    %10 = vector.multi_reduction <add>, %9, %cst_6 [1] : vector<8x32xf32> to vector<8xf32>
    %11 = vector.shape_cast %10 : vector<8xf32> to vector<8x1xf32>
    %cst_7 = arith.constant 3.200000e+01 : f32
    %12 = vector.broadcast %cst_7 : f32 to vector<8x1xf32>
    %13 = arith.divf %11, %12 : vector<8x1xf32>
    %14 = vector.broadcast %6 : vector<8x1xf32> to vector<8x32xf32>
    %15 = arith.subf %0, %14 : vector<8x32xf32>
    %cst_8 = arith.constant 9.99999974E-6 : f32
    %16 = vector.broadcast %cst_8 : f32 to vector<8x1xf32>
    %17 = arith.addf %13, %16 : vector<8x1xf32>
    %18 = math.rsqrt %17 : vector<8x1xf32>
    %19 = vector.broadcast %18 : vector<8x1xf32> to vector<8x32xf32>
    %20 = arith.mulf %15, %19 : vector<8x32xf32>
    %21 = vector.broadcast %1 : vector<1x32xf32> to vector<8x32xf32>
    %22 = arith.mulf %20, %21 : vector<8x32xf32>
    %23 = vector.broadcast %2 : vector<1x32xf32> to vector<8x32xf32>
    %24 = arith.addf %22, %23 : vector<8x32xf32>
    %c0_9 = arith.constant 0 : index
    %c0_10 = arith.constant 0 : index
    %25 = vector.load %arg5[%c0_9, %c0_10] : memref<32x96xf32, #tpu.memory_space<vmem>>, vector<32x96xf32>
    %cst_11 = arith.constant dense<0.000000e+00> : vector<8x96xf32>
    %26 = tpu.matmul %24, %25, %cst_11 {dimension_numbers = #tpu.dot_dimension_numbers<[1], [0], [0], [1], [0, 0, 1, 1], [], []>} : vector<8x32xf32>, vector<32x96xf32>, vector<8x96xf32> -> vector<8x96xf32>
    %c0_12 = arith.constant 0 : index
    %c0_13 = arith.constant 0 : index
    %27 = vector.load %arg6[%c0_12, %c0_13] : memref<1x96xf32, #tpu.memory_space<vmem>>, vector<1x96xf32>
    %28 = vector.broadcast %27 : vector<1x96xf32> to vector<8x96xf32>
    %29 = arith.addf %26, %28 : vector<8x96xf32>
    %c0_14 = arith.constant 0 : index
    %c0_15 = arith.constant 0 : index
    %c0_16 = arith.constant 0 : index
    %30 = vector.load %arg2[%c0_14, %c0_15, %c0_16] : memref<1x1x8xf32, #tpu.memory_space<vmem>>, vector<1x1x8xf32>
    %31 = vector.shape_cast %30 : vector<1x1x8xf32> to vector<1x8xf32>
    %cst_17 = arith.constant 5.000000e-01 : f32
    %32 = vector.broadcast %cst_17 : f32 to vector<1x8xf32>
    %33 = arith.cmpf ogt, %31, %32 : vector<1x8xf32>
    %34 = vector.shape_cast %33 : vector<1x8xi1> to vector<1x8xi1>
    %35 = vector.broadcast %34 : vector<1x8xi1> to vector<8x8xi1>
    %c0_18 = arith.constant 0 : index
    %c0_19 = arith.constant 0 : index
    %36 = vector.load %arg7[%c0_18, %c0_19] : memref<32x32xf32, #tpu.memory_space<vmem>>, vector<32x32xf32>
    %37 = vector.extract_strided_slice %29 {offsets = [0, 0], sizes = [8, 8], strides = [1, 1]} : vector<8x96xf32> to vector<8x8xf32>
    %38 = vector.extract_strided_slice %29 {offsets = [0, 32], sizes = [8, 8], strides = [1, 1]} : vector<8x96xf32> to vector<8x8xf32>
    %39 = vector.extract_strided_slice %29 {offsets = [0, 64], sizes = [8, 8], strides = [1, 1]} : vector<8x96xf32> to vector<8x8xf32>
    %cst_20 = arith.constant dense<0.000000e+00> : vector<8x8xf32>
    %40 = tpu.matmul %37, %38, %cst_20 {dimension_numbers = #tpu.dot_dimension_numbers<[1], [1], [0], [0], [0, 0, 1, 0], [], []>} : vector<8x8xf32>, vector<8x8xf32>, vector<8x8xf32> -> vector<8x8xf32>
    %cst_21 = arith.constant 0xCDA8965F : f32
    %41 = vector.broadcast %cst_21 : f32 to vector<8x8xf32>
    %42 = arith.select %35, %41, %40 : vector<8x8xi1>, vector<8x8xf32>
    %cst_22 = arith.constant dense<0xFF800000> : vector<8xf32>
    %43 = vector.multi_reduction <maximumf>, %42, %cst_22 [1] : vector<8x8xf32> to vector<8xf32>
    %44 = vector.shape_cast %43 : vector<8xf32> to vector<8x1xf32>
    %45 = vector.broadcast %44 : vector<8x1xf32> to vector<8x8xf32>
    %46 = arith.subf %42, %45 : vector<8x8xf32>
    %47 = math.exp %46 : vector<8x8xf32>
    %cst_23 = arith.constant dense<0.000000e+00> : vector<8xf32>
    %48 = vector.multi_reduction <add>, %47, %cst_23 [1] : vector<8x8xf32> to vector<8xf32>
    %49 = vector.shape_cast %48 : vector<8xf32> to vector<8x1xf32>
    %50 = tpu.reciprocal %49 : vector<8x1xf32> -> vector<8x1xf32>
    %51 = vector.broadcast %50 : vector<8x1xf32> to vector<8x8xf32>
    %52 = arith.mulf %47, %51 : vector<8x8xf32>
    %cst_24 = arith.constant dense<0.000000e+00> : vector<8x8xf32>
    %53 = tpu.matmul %52, %39, %cst_24 {dimension_numbers = #tpu.dot_dimension_numbers<[1], [0], [0], [1], [0, 0, 1, 1], [], []>} : vector<8x8xf32>, vector<8x8xf32>, vector<8x8xf32> -> vector<8x8xf32>
    %54 = vector.extract_strided_slice %36 {offsets = [0, 0], sizes = [8, 32], strides = [1, 1]} : vector<32x32xf32> to vector<8x32xf32>
    %cst_25 = arith.constant dense<0.000000e+00> : vector<8x32xf32>
    %55 = tpu.matmul %53, %54, %cst_25 {dimension_numbers = #tpu.dot_dimension_numbers<[1], [0], [0], [1], [0, 0, 1, 1], [], []>} : vector<8x8xf32>, vector<8x32xf32>, vector<8x32xf32> -> vector<8x32xf32>
    %56 = vector.extract_strided_slice %29 {offsets = [0, 8], sizes = [8, 8], strides = [1, 1]} : vector<8x96xf32> to vector<8x8xf32>
    %57 = vector.extract_strided_slice %29 {offsets = [0, 40], sizes = [8, 8], strides = [1, 1]} : vector<8x96xf32> to vector<8x8xf32>
    %58 = vector.extract_strided_slice %29 {offsets = [0, 72], sizes = [8, 8], strides = [1, 1]} : vector<8x96xf32> to vector<8x8xf32>
    %cst_26 = arith.constant dense<0.000000e+00> : vector<8x8xf32>
    %59 = tpu.matmul %56, %57, %cst_26 {dimension_numbers = #tpu.dot_dimension_numbers<[1], [1], [0], [0], [0, 0, 1, 0], [], []>} : vector<8x8xf32>, vector<8x8xf32>, vector<8x8xf32> -> vector<8x8xf32>
    %cst_27 = arith.constant 0xCDA8965F : f32
    %60 = vector.broadcast %cst_27 : f32 to vector<8x8xf32>
    %61 = arith.select %35, %60, %59 : vector<8x8xi1>, vector<8x8xf32>
    %cst_28 = arith.constant dense<0xFF800000> : vector<8xf32>
    %62 = vector.multi_reduction <maximumf>, %61, %cst_28 [1] : vector<8x8xf32> to vector<8xf32>
    %63 = vector.shape_cast %62 : vector<8xf32> to vector<8x1xf32>
    %64 = vector.broadcast %63 : vector<8x1xf32> to vector<8x8xf32>
    %65 = arith.subf %61, %64 : vector<8x8xf32>
    %66 = math.exp %65 : vector<8x8xf32>
    %cst_29 = arith.constant dense<0.000000e+00> : vector<8xf32>
    %67 = vector.multi_reduction <add>, %66, %cst_29 [1] : vector<8x8xf32> to vector<8xf32>
    %68 = vector.shape_cast %67 : vector<8xf32> to vector<8x1xf32>
    %69 = tpu.reciprocal %68 : vector<8x1xf32> -> vector<8x1xf32>
    %70 = vector.broadcast %69 : vector<8x1xf32> to vector<8x8xf32>
    %71 = arith.mulf %66, %70 : vector<8x8xf32>
    %cst_30 = arith.constant dense<0.000000e+00> : vector<8x8xf32>
    %72 = tpu.matmul %71, %58, %cst_30 {dimension_numbers = #tpu.dot_dimension_numbers<[1], [0], [0], [1], [0, 0, 1, 1], [], []>} : vector<8x8xf32>, vector<8x8xf32>, vector<8x8xf32> -> vector<8x8xf32>
    %73 = vector.extract_strided_slice %36 {offsets = [8, 0], sizes = [8, 32], strides = [1, 1]} : vector<32x32xf32> to vector<8x32xf32>
    %cst_31 = arith.constant dense<0.000000e+00> : vector<8x32xf32>
    %74 = tpu.matmul %72, %73, %cst_31 {dimension_numbers = #tpu.dot_dimension_numbers<[1], [0], [0], [1], [0, 0, 1, 1], [], []>} : vector<8x8xf32>, vector<8x32xf32>, vector<8x32xf32> -> vector<8x32xf32>
    %75 = arith.addf %55, %74 : vector<8x32xf32>
    %76 = vector.extract_strided_slice %29 {offsets = [0, 16], sizes = [8, 8], strides = [1, 1]} : vector<8x96xf32> to vector<8x8xf32>
    %77 = vector.extract_strided_slice %29 {offsets = [0, 48], sizes = [8, 8], strides = [1, 1]} : vector<8x96xf32> to vector<8x8xf32>
    %78 = vector.extract_strided_slice %29 {offsets = [0, 80], sizes = [8, 8], strides = [1, 1]} : vector<8x96xf32> to vector<8x8xf32>
    %cst_32 = arith.constant dense<0.000000e+00> : vector<8x8xf32>
    %79 = tpu.matmul %76, %77, %cst_32 {dimension_numbers = #tpu.dot_dimension_numbers<[1], [1], [0], [0], [0, 0, 1, 0], [], []>} : vector<8x8xf32>, vector<8x8xf32>, vector<8x8xf32> -> vector<8x8xf32>
    %cst_33 = arith.constant 0xCDA8965F : f32
    %80 = vector.broadcast %cst_33 : f32 to vector<8x8xf32>
    %81 = arith.select %35, %80, %79 : vector<8x8xi1>, vector<8x8xf32>
    %cst_34 = arith.constant dense<0xFF800000> : vector<8xf32>
    %82 = vector.multi_reduction <maximumf>, %81, %cst_34 [1] : vector<8x8xf32> to vector<8xf32>
    %83 = vector.shape_cast %82 : vector<8xf32> to vector<8x1xf32>
    %84 = vector.broadcast %83 : vector<8x1xf32> to vector<8x8xf32>
    %85 = arith.subf %81, %84 : vector<8x8xf32>
    %86 = math.exp %85 : vector<8x8xf32>
    %cst_35 = arith.constant dense<0.000000e+00> : vector<8xf32>
    %87 = vector.multi_reduction <add>, %86, %cst_35 [1] : vector<8x8xf32> to vector<8xf32>
    %88 = vector.shape_cast %87 : vector<8xf32> to vector<8x1xf32>
    %89 = tpu.reciprocal %88 : vector<8x1xf32> -> vector<8x1xf32>
    %90 = vector.broadcast %89 : vector<8x1xf32> to vector<8x8xf32>
    %91 = arith.mulf %86, %90 : vector<8x8xf32>
    %cst_36 = arith.constant dense<0.000000e+00> : vector<8x8xf32>
    %92 = tpu.matmul %91, %78, %cst_36 {dimension_numbers = #tpu.dot_dimension_numbers<[1], [0], [0], [1], [0, 0, 1, 1], [], []>} : vector<8x8xf32>, vector<8x8xf32>, vector<8x8xf32> -> vector<8x8xf32>
    %93 = vector.extract_strided_slice %36 {offsets = [16, 0], sizes = [8, 32], strides = [1, 1]} : vector<32x32xf32> to vector<8x32xf32>
    %cst_37 = arith.constant dense<0.000000e+00> : vector<8x32xf32>
    %94 = tpu.matmul %92, %93, %cst_37 {dimension_numbers = #tpu.dot_dimension_numbers<[1], [0], [0], [1], [0, 0, 1, 1], [], []>} : vector<8x8xf32>, vector<8x32xf32>, vector<8x32xf32> -> vector<8x32xf32>
    %95 = arith.addf %75, %94 : vector<8x32xf32>
    %96 = vector.extract_strided_slice %29 {offsets = [0, 24], sizes = [8, 8], strides = [1, 1]} : vector<8x96xf32> to vector<8x8xf32>
    %97 = vector.extract_strided_slice %29 {offsets = [0, 56], sizes = [8, 8], strides = [1, 1]} : vector<8x96xf32> to vector<8x8xf32>
    %98 = vector.extract_strided_slice %29 {offsets = [0, 88], sizes = [8, 8], strides = [1, 1]} : vector<8x96xf32> to vector<8x8xf32>
    %cst_38 = arith.constant dense<0.000000e+00> : vector<8x8xf32>
    %99 = tpu.matmul %96, %97, %cst_38 {dimension_numbers = #tpu.dot_dimension_numbers<[1], [1], [0], [0], [0, 0, 1, 0], [], []>} : vector<8x8xf32>, vector<8x8xf32>, vector<8x8xf32> -> vector<8x8xf32>
    %cst_39 = arith.constant 0xCDA8965F : f32
    %100 = vector.broadcast %cst_39 : f32 to vector<8x8xf32>
    %101 = arith.select %35, %100, %99 : vector<8x8xi1>, vector<8x8xf32>
    %cst_40 = arith.constant dense<0xFF800000> : vector<8xf32>
    %102 = vector.multi_reduction <maximumf>, %101, %cst_40 [1] : vector<8x8xf32> to vector<8xf32>
    %103 = vector.shape_cast %102 : vector<8xf32> to vector<8x1xf32>
    %104 = vector.broadcast %103 : vector<8x1xf32> to vector<8x8xf32>
    %105 = arith.subf %101, %104 : vector<8x8xf32>
    %106 = math.exp %105 : vector<8x8xf32>
    %cst_41 = arith.constant dense<0.000000e+00> : vector<8xf32>
    %107 = vector.multi_reduction <add>, %106, %cst_41 [1] : vector<8x8xf32> to vector<8xf32>
    %108 = vector.shape_cast %107 : vector<8xf32> to vector<8x1xf32>
    %109 = tpu.reciprocal %108 : vector<8x1xf32> -> vector<8x1xf32>
    %110 = vector.broadcast %109 : vector<8x1xf32> to vector<8x8xf32>
    %111 = arith.mulf %106, %110 : vector<8x8xf32>
    %cst_42 = arith.constant dense<0.000000e+00> : vector<8x8xf32>
    %112 = tpu.matmul %111, %98, %cst_42 {dimension_numbers = #tpu.dot_dimension_numbers<[1], [0], [0], [1], [0, 0, 1, 1], [], []>} : vector<8x8xf32>, vector<8x8xf32>, vector<8x8xf32> -> vector<8x8xf32>
    %113 = vector.extract_strided_slice %36 {offsets = [24, 0], sizes = [8, 32], strides = [1, 1]} : vector<32x32xf32> to vector<8x32xf32>
    %cst_43 = arith.constant dense<0.000000e+00> : vector<8x32xf32>
    %114 = tpu.matmul %112, %113, %cst_43 {dimension_numbers = #tpu.dot_dimension_numbers<[1], [0], [0], [1], [0, 0, 1, 1], [], []>} : vector<8x8xf32>, vector<8x32xf32>, vector<8x32xf32> -> vector<8x32xf32>
    %115 = arith.addf %95, %114 : vector<8x32xf32>
    %116 = arith.addf %0, %115 : vector<8x32xf32>
    %c0_44 = arith.constant 0 : index
    %c0_45 = arith.constant 0 : index
    %117 = vector.load %arg8[%c0_44, %c0_45] : memref<1x32xf32, #tpu.memory_space<vmem>>, vector<1x32xf32>
    %118 = vector.broadcast %117 : vector<1x32xf32> to vector<8x32xf32>
    %119 = arith.addf %116, %118 : vector<8x32xf32>
    %c0_46 = arith.constant 0 : index
    %c0_47 = arith.constant 0 : index
    %120 = vector.load %arg9[%c0_46, %c0_47] : memref<1x32xf32, #tpu.memory_space<vmem>>, vector<1x32xf32>
    %c0_48 = arith.constant 0 : index
    %c0_49 = arith.constant 0 : index
    %121 = vector.load %arg10[%c0_48, %c0_49] : memref<1x32xf32, #tpu.memory_space<vmem>>, vector<1x32xf32>
    %cst_50 = arith.constant dense<0.000000e+00> : vector<8xf32>
    %122 = vector.multi_reduction <add>, %119, %cst_50 [1] : vector<8x32xf32> to vector<8xf32>
    %123 = vector.shape_cast %122 : vector<8xf32> to vector<8x1xf32>
    %cst_51 = arith.constant 3.200000e+01 : f32
    %124 = vector.broadcast %cst_51 : f32 to vector<8x1xf32>
    %125 = arith.divf %123, %124 : vector<8x1xf32>
    %126 = vector.broadcast %125 : vector<8x1xf32> to vector<8x32xf32>
    %127 = arith.subf %119, %126 : vector<8x32xf32>
    %128 = arith.mulf %127, %127 : vector<8x32xf32>
    %cst_52 = arith.constant dense<0.000000e+00> : vector<8xf32>
    %129 = vector.multi_reduction <add>, %128, %cst_52 [1] : vector<8x32xf32> to vector<8xf32>
    %130 = vector.shape_cast %129 : vector<8xf32> to vector<8x1xf32>
    %cst_53 = arith.constant 3.200000e+01 : f32
    %131 = vector.broadcast %cst_53 : f32 to vector<8x1xf32>
    %132 = arith.divf %130, %131 : vector<8x1xf32>
    %133 = vector.broadcast %125 : vector<8x1xf32> to vector<8x32xf32>
    %134 = arith.subf %119, %133 : vector<8x32xf32>
    %cst_54 = arith.constant 9.99999974E-6 : f32
    %135 = vector.broadcast %cst_54 : f32 to vector<8x1xf32>
    %136 = arith.addf %132, %135 : vector<8x1xf32>
    %137 = math.rsqrt %136 : vector<8x1xf32>
    %138 = vector.broadcast %137 : vector<8x1xf32> to vector<8x32xf32>
    %139 = arith.mulf %134, %138 : vector<8x32xf32>
    %140 = vector.broadcast %120 : vector<1x32xf32> to vector<8x32xf32>
    %141 = arith.mulf %139, %140 : vector<8x32xf32>
    %142 = vector.broadcast %121 : vector<1x32xf32> to vector<8x32xf32>
    %143 = arith.addf %141, %142 : vector<8x32xf32>
    %c0_55 = arith.constant 0 : index
    %c0_56 = arith.constant 0 : index
    %144 = vector.load %arg11[%c0_55, %c0_56] : memref<32x128xf32, #tpu.memory_space<vmem>>, vector<32x128xf32>
    %cst_57 = arith.constant dense<0.000000e+00> : vector<8x128xf32>
    %145 = tpu.matmul %143, %144, %cst_57 {dimension_numbers = #tpu.dot_dimension_numbers<[1], [0], [0], [1], [0, 0, 1, 1], [], []>} : vector<8x32xf32>, vector<32x128xf32>, vector<8x128xf32> -> vector<8x128xf32>
    %c0_58 = arith.constant 0 : index
    %c0_59 = arith.constant 0 : index
    %146 = vector.load %arg12[%c0_58, %c0_59] : memref<1x128xf32, #tpu.memory_space<vmem>>, vector<1x128xf32>
    %147 = vector.broadcast %146 : vector<1x128xf32> to vector<8x128xf32>
    %148 = arith.addf %145, %147 : vector<8x128xf32>
    %cst_60 = arith.constant 0.000000e+00 : f32
    %149 = vector.broadcast %cst_60 : f32 to vector<8x128xf32>
    %150 = arith.maximumf %148, %149 : vector<8x128xf32>
    %c0_61 = arith.constant 0 : index
    %c0_62 = arith.constant 0 : index
    %151 = vector.load %arg13[%c0_61, %c0_62] : memref<128x32xf32, #tpu.memory_space<vmem>>, vector<128x32xf32>
    %cst_63 = arith.constant dense<0.000000e+00> : vector<8x32xf32>
    %152 = tpu.matmul %150, %151, %cst_63 {dimension_numbers = #tpu.dot_dimension_numbers<[1], [0], [0], [1], [0, 0, 1, 1], [], []>} : vector<8x128xf32>, vector<128x32xf32>, vector<8x32xf32> -> vector<8x32xf32>
    %c0_64 = arith.constant 0 : index
    %c0_65 = arith.constant 0 : index
    %153 = vector.load %arg14[%c0_64, %c0_65] : memref<1x32xf32, #tpu.memory_space<vmem>>, vector<1x32xf32>
    %154 = vector.broadcast %153 : vector<1x32xf32> to vector<8x32xf32>
    %155 = arith.addf %152, %154 : vector<8x32xf32>
    %156 = arith.addf %119, %155 : vector<8x32xf32>
    %c0_66 = arith.constant 0 : index
    %c0_67 = arith.constant 0 : index
    %157 = vector.load %arg15[%c0_66, %c0_67] : memref<8x32xf32, #tpu.memory_space<vmem>>, vector<8x32xf32>
    tpu.vector_store %arg15[%c0_66, %c0_67], %156 {strides = array<i32>} : memref<8x32xf32, #tpu.memory_space<vmem>>, vector<8x32xf32>,
    return
  }
  func.func @transform_0(%arg0: i32) -> (i32, i32) {
    %c0_i32 = arith.constant 0 : i32
    %c0_i32_0 = arith.constant 0 : i32
    return %arg0, %c0_i32 : i32, i32
  }
  func.func @transform_1(%arg0: i32) -> (i32, i32, i32) {
    %c0_i32 = arith.constant 0 : i32
    %c0_i32_0 = arith.constant 0 : i32
    %c0_i32_1 = arith.constant 0 : i32
    return %arg0, %c0_i32, %c0_i32_0 : i32, i32, i32
  }
  func.func @transform_2(%arg0: i32) -> (i32, i32) {
    %c0_i32 = arith.constant 0 : i32
    %c0_i32_0 = arith.constant 0 : i32
    %c0_i32_1 = arith.constant 0 : i32
    return %c0_i32, %c0_i32_0 : i32, i32
  }
  func.func @transform_3(%arg0: i32) -> (i32, i32) {
    %c0_i32 = arith.constant 0 : i32
    %c0_i32_0 = arith.constant 0 : i32
    %c0_i32_1 = arith.constant 0 : i32
    return %c0_i32, %c0_i32_0 : i32, i32
  }
  func.func @transform_4(%arg0: i32) -> (i32, i32) {
    %c0_i32 = arith.constant 0 : i32
    %c0_i32_0 = arith.constant 0 : i32
    %c0_i32_1 = arith.constant 0 : i32
    return %c0_i32, %c0_i32_0 : i32, i32
  }
  func.func @transform_5(%arg0: i32) -> (i32, i32) {
    %c0_i32 = arith.constant 0 : i32
    %c0_i32_0 = arith.constant 0 : i32
    %c0_i32_1 = arith.constant 0 : i32
    return %c0_i32, %c0_i32_0 : i32, i32
  }
  func.func @transform_6(%arg0: i32) -> (i32, i32) {
    %c0_i32 = arith.constant 0 : i32
    %c0_i32_0 = arith.constant 0 : i32
    %c0_i32_1 = arith.constant 0 : i32
    return %c0_i32, %c0_i32_0 : i32, i32
  }
  func.func @transform_7(%arg0: i32) -> (i32, i32) {
    %c0_i32 = arith.constant 0 : i32
    %c0_i32_0 = arith.constant 0 : i32
    %c0_i32_1 = arith.constant 0 : i32
    return %c0_i32, %c0_i32_0 : i32, i32
  }
  func.func @transform_8(%arg0: i32) -> (i32, i32) {
    %c0_i32 = arith.constant 0 : i32
    %c0_i32_0 = arith.constant 0 : i32
    %c0_i32_1 = arith.constant 0 : i32
    return %c0_i32, %c0_i32_0 : i32, i32
  }
  func.func @transform_9(%arg0: i32) -> (i32, i32) {
    %c0_i32 = arith.constant 0 : i32
    %c0_i32_0 = arith.constant 0 : i32
    %c0_i32_1 = arith.constant 0 : i32
    return %c0_i32, %c0_i32_0 : i32, i32
  }
  func.func @transform_10(%arg0: i32) -> (i32, i32) {
    %c0_i32 = arith.constant 0 : i32
    %c0_i32_0 = arith.constant 0 : i32
    %c0_i32_1 = arith.constant 0 : i32
    return %c0_i32, %c0_i32_0 : i32, i32
  }
  func.func @transform_11(%arg0: i32) -> (i32, i32) {
    %c0_i32 = arith.constant 0 : i32
    %c0_i32_0 = arith.constant 0 : i32
    %c0_i32_1 = arith.constant 0 : i32
    return %c0_i32, %c0_i32_0 : i32, i32
  }
  func.func @transform_12(%arg0: i32) -> (i32, i32) {
    %c0_i32 = arith.constant 0 : i32
    %c0_i32_0 = arith.constant 0 : i32
    %c0_i32_1 = arith.constant 0 : i32
    return %c0_i32, %c0_i32_0 : i32, i32
  }
  func.func @transform_13(%arg0: i32) -> (i32, i32) {
    %c0_i32 = arith.constant 0 : i32
    %c0_i32_0 = arith.constant 0 : i32
    %c0_i32_1 = arith.constant 0 : i32
    return %c0_i32, %c0_i32_0 : i32, i32
  }
  func.func @transform_14(%arg0: i32) -> (i32, i32) {
    %c0_i32 = arith.constant 0 : i32
    %c0_i32_0 = arith.constant 0 : i32
    return %arg0, %c0_i32 : i32, i32
  }
}

</mosaic_0001>

<bundles_post_ra>
// kernel: tpu_custom_call.1
= control target key start
LH: loop header
LB: loop body
LE: loop exit
PB: predicated region body
PF: predicated region fallthrough
CT: control target
= control target key end

     0   :  { %s2667_s0 = inlined_call_operand.vmem [shape: f32[16,32], index: 0, kind: input, shape index: {}]   ;;  %s2668_s1 = inlined_call_operand.vmem [shape: f32[2,1,8], index: 1, kind: input, shape index: {}]   ;;  %s2669_s2 = inlined_call_operand.vmem [shape: f32[1,32], index: 2, kind: input, shape index: {}]   ;;  %s2670_s3 = inlined_call_operand.vmem [shape: f32[1,32], index: 3, kind: input, shape index: {}]   ;;  %s2671_s4 = inlined_call_operand.vmem [shape: f32[32,96], index: 4, kind: input, shape index: {}]   ;;  %s2672_s5 = inlined_call_operand.vmem [shape: f32[1,96], index: 5, kind: input, shape index: {}]   ;;  %s2673_s6 = inlined_call_operand.vmem [shape: f32[32,32], index: 6, kind: input, shape index: {}]   ;;  %s2674_s7 = inlined_call_operand.vmem [shape: f32[1,32], index: 7, kind: input, shape index: {}]   ;;  %s2675_s8 = inlined_call_operand.vmem [shape: f32[1,32], index: 8, kind: input, shape index: {}]   ;;  %s2676_s9 = inlined_call_operand.vmem [shape: f32[1,32], index: 9, kind: input, shape index: {}]   ;;  %s2677_s10 = inlined_call_operand.vmem [shape: f32[32,128], index: 10, kind: input, shape index: {}]   ;;  %s2678_s11 = inlined_call_operand.vmem [shape: f32[1,128], index: 11, kind: input, shape index: {}]   ;;  %s2679_s12 = inlined_call_operand.vmem [shape: f32[128,32], index: 12, kind: input, shape index: {}]   ;;  %s2680_s13 = inlined_call_operand.vmem [shape: f32[1,32], index: 13, kind: input, shape index: {}]   ;;  %s2681_s14 = inlined_call_operand.hbm [shape: f32[16,32], index: 14, kind: output, shape index: {}]  }
   0x1   :  { %2682 = sst [smem:[#allocation6_spill]] %s2667_s0 }
   0x2   :  { %2683 = sst [smem:[#allocation7_spill]] %s2668_s1 }
   0x3   :  { %2684 = sst [smem:[#allocation8_spill]] %s2669_s2 }
   0x4   :  { %19 = vsyncpa [#allocation3], 0 }
   0x5   :  { %21 = vsyncpa [#allocation3 + $0x1], 0  ;;  %s2332_s29 = smov 0   ;;  %s2334_s30 = smov 0  }
   0x6   :  { %s2336_s15 = smov 0   ;;  %s2338_s16 = smov 0  }
   0x7 LB: > { %s2353_s17 = sadd.s32 4294967295, %s2239_s16   ;;  %s1863_s18 = sadd.s32 4294967294, %s2239_s16   ;;  %s2239_s16 = sphi %s2338_s16, %s2695_s16   ;;  %s2235_s15 = sphi %s2336_s15, %s2694_s15   ;;  %s2231_s30 = sphi %s2334_s30, %s2693_s30   ;;  %s2227_s29 = sphi %s2332_s29, %s2692_s29  }
   0x8   : > { %s2357_s19 = sadd.s32 1, %s2239_s16   ;;  %s338_s20 = sadd.s32 1, %s2235_s15 }
   0x9   : > { %s335_s21 = ssub.s32 %s2239_s16, %s2357_s19  ;;  %p348_p0 = scmp.ne.s32.totalorder %s2235_s15, %s2231_s30 }
   0xa   : > { %p336_p1 = scmp.eq.s32.totalorder %s335_s21, 0  ;;  %p349_p2 = scmp.eq.s32.totalorder %s2353_s17, 1 }
   0xb   : > { %p354_p3 = scmp.ne.s32.totalorder %s2231_s30, %s2227_s29  ;;  %p355_p4 = scmp.eq.s32.totalorder %s1863_s18, 1 }
   0xc   : > { %s2368_s22 = scalar_select %p336_p1, %s2235_s15, %s338_s20  }
   0xd   : > { %p2370_p5 = por %p349_p2, %p348_p0  ;;  %p2374_p6 = por %p355_p4, %p354_p3 }
   0xe   : > { %2685 = sst [smem:[#allocation5_spill]] %s2368_s22  ;;  %p1866_p7 = scmp.ge.s32.totalorder %s2239_s16, 1 }
   0xf   : > { %p422_p8 = scmp.lt.s32.totalorder %s2239_s16, 3 }
  0x11   : > { %p423_p9 = pnand %p1866_p7, %p422_p8 }
  0x12   : > { %p470_p10 = scmp.lt.s32.totalorder (!%p423_p9), %s2353_s17, 1  ;;  %vm480_vm0 = vcmask (!%p423_p9), 261120   ;;  %s2688_s0 = sld [smem:[#allocation6_spill]] (!%p423_p9)  ;;  %v509_v7 = vld [vmem:[%s2671_s4] sm:$0xff] (!%p423_p9)  ;;  %v510_v8 = vld [vmem:[%s2671_s4 + $0x8] sm:$0xff] (!%p423_p9)  ;;  %v511_v9 = vld [vmem:[%s2671_s4 + $0x10] sm:$0xff] (!%p423_p9)  ;;  %v596_v30 = vlaneseq (!%p423_p9) }
  0x13   : > { %426 = sbr.rel (%p423_p9) target bundleno = 4197 (0x1065), region = 76  ;;  %v2241_v10 = vmov (!%p423_p9), 0.0|0.0   ;;  %v2068_v11 = vpack.c.bf16 (!%p423_p9), %v510_v8, %v509_v7  ;;  %v512_v12 = vld [vmem:[%s2671_s4 + $0x18] sm:$0xff] (!%p423_p9)  ;;  %vm2242_vm1 = vmmov (!%p423_p9), 0   ;;  %v2243_v13 = vmov (!%p423_p9), 0.0   ;;  %s2689_s2 = sld [smem:[#allocation8_spill]] (!%p423_p9) }
  0x14   : > { %2067 = vmatprep.subr.bf16.mxu0 (!%p423_p9), %v2241_v10  ;;  %1958 = vmatprep.mubr.msk.f32.mxu0 (!%p423_p9), %vm2242_vm1, %v2243_v13  ;;  %v2071_v14 = vpack.c.bf16 (!%p423_p9), %v512_v12, %v511_v9  ;;  %v1870_v21 = vld [vmem:[%s2670_s3] ss:$0 sm:$0xff] (!%p423_p9)  ;;  %s2244_s28 = smov (!%p423_p9), 64   ;;  %vm608_vm2 = vcmask (!%p423_p9), 64512   ;;  %s2690_s1 = sld [smem:[#allocation7_spill]] (!%p423_p9)  ;;  %v597_v32 = vshrl.u32 (!%p423_p9), %v596_v30, 7 }
  0x15   : > { %1986 = vmatprep.subr.mxu1 (!%p423_p9), %v2243_v13  ;;  %1988 = vmatprep.mubr.msk.f32.mxu1 (!%p423_p9), %vm2242_vm1, %v2243_v13  ;;  %v1871_v24 = vld [vmem:[%s2672_s5] ss:$0 sm:$0xff] (!%p423_p9)  ;;  %v2247_v34 = vmov (!%p423_p9), 0   ;;  %s2252_s22 = smov (!%p423_p9), 48   ;;  %s2253_s20 = smov (!%p423_p9), 72   ;;  %v602_v7 = vld [vmem:[%s2673_s6 + $0x8] sm:$0xff] (!%p423_p9) }
  0x16   : > { %2069 = vmatpush3.bf16.msra.mxu0 (!%p423_p9), %v2068_v11  ;;  %v598_v33 = vsub.s32 (!%p423_p9), 0, %v597_v32  ;;  %v601_v51 = vld [vmem:[%s2673_s6] sm:$0xff] (!%p423_p9)  ;;  %s2254_s27 = smov (!%p423_p9), 104   ;;  %v603_v32 = vld [vmem:[%s2673_s6 + $0x10] sm:$0xff] (!%p423_p9) }
  0x17   : > { %2070 = vmatprep.subr.bf16.mxu0 (!%p423_p9), %v2241_v10  ;;  %1987 = vmatpush3.msra.mxu1 (!%p423_p9), %v601_v51 }
  0x18   : > { %1996 = vmatprep.subr.mxu1 (!%p423_p9), %v2243_v13 }
  0x19   : > { %v1869_v19 = vld [vmem:[%s2689_s2] ss:$0 sm:$0xff] (!%p423_p9) }
  0x1a   : > { %s2382_s25 = scalar_select %p470_p10, %s2353_s17, 1  ;;  %2072 = vmatpush3.bf16.msra.mxu0 %v2071_v14 }
  0x1b   : > { %1961 = vmatprep.subr.mxu0 %v2243_v13 }
  0x1c   : > { %s1868_s26 = sshll.u32 %s2382_s25, 3  ;;  %s476_s21 = scalar_lea.vmem %s2690_s1, %s2382_s25 }
  0x1d   : > { %s473_s18 = scalar_lea.vmem %s2688_s0, %s1868_s26  ;;  %s2246_s0 = smov 88   ;;  %v593_v31 = vld [vmem:[%s476_s21] sm:$0x1] }
  0x1e   : > { %v2388_v0 = vld [vmem:[%s473_s18] sm:$0xff]  ;;  %s2245_s18 = smov 96   ;;  %vm594_vm3 = vcmp.gt.f32.partialorder %v593_v31, 0.5  ;;  %s2248_s25 = smov 120  }
  0x1f   : > { %v481_v1 = vsel %vm480_vm0, %v2388_v0, 0.0  ;;  %v595_v35 = vsel %vm594_vm3, 1, %v2247_v34  ;;  %s1896_s1 = sshll.u32 %s2353_s17, 7 }
  0x20   : > { %482 = vadd.xlane.f32.xlu0 %v481_v1  ;;  %v2442_v36 = vrot.slane %v595_v35, %v598_v33 }
  0x22   : > { %vm600_vm4 = vcmp.eq.s32.totalorder %v2442_v36, 1  ;;  %v604_v36 = vld [vmem:[%s2673_s6 + $0x18] sm:$0xff] }
  0xad   : > { %v483_v2 = vpop.xlane.xlu0 %482 }
  0xae   : > { %v485_v3 = vmul.f32 0.03125, %v483_v2 }
  0xb0   : > { %v486_v4 = vsub.f32 %v2388_v0, %v485_v3 }
  0xb2   : > { %v487_v5 = vmul.f32 %v486_v4, %v486_v4 }
  0xb4   : > { %v488_v6 = vsel %vm480_vm0, %v487_v5, 0.0 }
  0xb5   : > { %489 = vadd.xlane.f32.xlu0 %v488_v6 }
 0x142   : > { %v490_v15 = vpop.xlane.xlu0 %489 }
 0x143   : > { %v491_v16 = vmul.f32 0.03125, %v490_v15 }
 0x145   : > { %v492_v17 = vadd.f32 1e-05, %v491_v16 }
 0x147   : > { %2157 = vrsqrt.f32 %v492_v17 }
 0x151   : > { %v2158_v18 = vpop.eup %2157 }
 0x152   : > { %v494_v20 = vmul.f32 %v2158_v18, %v486_v4 }
 0x154   : > { %v501_v22 = vmul.f32 %v1869_v19, %v494_v20 }
 0x156   : > { %v508_v23 = vadd.f32 %v1870_v21, %v501_v22 }
 0x158   : > { %1959 = vmatmul.mubr.msk.f32.vlgmr.msra.gmra.mrb[0].mxu0 %vm480_vm0, %v508_v23 }
 0x159   : > { %1963 = vmatprep.mubr.msk.f32.mxu0 %vm2242_vm1, %v2243_v13 }
 0x22b   : > { %v589_v25 = vpop.f32.mrb[0].mxu0 }
 0x22c   : > { %v2426_v26 = vadd.f32 %v1871_v24, %v589_v25  ;;  %v1960_v27 = vpop.f32.mrb[1].mxu0 }
 0x22e   : > { %695 = vrot.lane.b32.xlu0 %v2426_v26, %s2244_s28  ;;  %606 = vrot.lane.b32.xlu1 %v2426_v26, %s2245_s18  ;;  %s2249_s28 = smov 56   ;;  %s2250_s18 = smov 80  }
 0x232   : > { %773 = vrot.lane.b32.xlu0 %v2426_v26, %s2246_s0  ;;  %s2251_s0 = smov 112  }
 0x2a0   : > { %v607_v28 = vpop.permute.xlu1 %606  ;;  %v696_v29 = vpop.permute.xlu0 %695 }
 0x2a1   : > { %1962 = vmatpush3.xpose.msk.msra.mxu0 %vm608_vm2, %v607_v28 }
 0x2a2   : > { %1966 = vmatprep.subr.mxu0 %v2243_v13 }
 0x2a4   : > { %1964 = vmatmul.mubr.msk.f32.vlgmr.msra.gmra.mrb[2].mxu0 %vm608_vm2, %v2426_v26  ;;  %v774_v46 = vpop.permute.xlu0 %773 }
 0x2a5   : > { %1967 = vmatpush3.msra.mxu0 %v696_v29  ;;  %1968 = vmatprep.mubr.msk.f32.mxu0 %vm2242_vm1, %v2243_v13 }
 0x2a6   : > { %1971 = vmatprep.subr.mxu0 %v2243_v13 }
 0x377   : > { %v679_v37 = vpop.f32.mrb[2].mxu0 }
 0x378   : > { %v683_v38 = vsel %vm600_vm4, -3.5355338e+08, %v679_v37  ;;  %v1965_v39 = vpop.f32.mrb[3].mxu0 }
 0x379   : > { %v684_v40 = vsel %vm608_vm2, %v683_v38, -inf }
 0x37a   : > { %685 = vmax.xlane.f32.xlu1 %v684_v40 }
 0x407   : > { %v686_v41 = vpop.xlane.xlu1 %685 }
 0x408   : > { %v687_v42 = vsub.f32 %v683_v38, %v686_v41 }
 0x40a   : > { %v688_v43 = vmul.f32 1.442695, %v687_v42 }
 0x40c   : > { %2159 = vpow2.f32 %v688_v43 }
 0x416   : > { %v2160_v44 = vpop.eup %2159 }
 0x417   : > { %v690_v45 = vsel %vm608_vm2, %v2160_v44, 0.0 }
 0x418   : > { %691 = vadd.xlane.f32.xlu0 %v690_v45 }
 0x42e   : > { %771 = vrot.lane.b32.xlu0 %v2426_v26, %s2248_s25 }
 0x4a5   : > { %v692_v47 = vpop.xlane.xlu0 %691 }
 0x4a6   : > { %2161 = vrcp.f32 %v692_v47 }
 0x4a9   : > { %v772_v50 = vpop.permute.xlu0 %771 }
 0x4b0   : > { %v2162_v48 = vpop.eup %2161 }
 0x4b1   : > { %v694_v49 = vmul.f32 %v2162_v48, %v2160_v44 }
 0x4b3   : > { %1969 = vmatmul.mubr.msk.f32.vlgmr.msra.gmra.mrb[4].mxu0 %vm608_vm2, %v694_v49 }
 0x4b4   : > { %1972 = vmatpush3.xpose.msk.msra.mxu0 %vm608_vm2, %v774_v46  ;;  %1973 = vmatprep.mubr.msk.f32.mxu0 %vm2242_vm1, %v2243_v13 }
 0x4b5   : > { %1976 = vmatprep.subr.mxu0 %v2243_v13 }
 0x4b7   : > { %1974 = vmatmul.mubr.msk.f32.vlgmr.msra.gmra.mrb[6].mxu0 %vm608_vm2, %v772_v50 }
 0x4b8   : > { %1978 = vmatprep.mubr.msk.f32.mxu0 %vm2242_vm1, %v2243_v13 }
 0x586   : > { %v767_v52 = vpop.f32.mrb[4].mxu0 }
 0x587   : > { %v1970_v53 = vpop.f32.mrb[5].mxu0  ;;  %1989 = vmatmul.mubr.msk.f32.vlgmr.msra.gmra.mrb[0].mxu1 %vm608_vm2, %v767_v52 }
 0x588   : > { %1998 = vmatprep.mubr.msk.f32.mxu1 %vm2242_vm1, %v2243_v13 }
 0x58a   : > { %v845_v54 = vpop.f32.mrb[6].mxu0 }
 0x58b   : > { %v849_v55 = vsel %vm600_vm4, -3.5355338e+08, %v845_v54  ;;  %v1975_v56 = vpop.f32.mrb[7].mxu0 }
 0x58c   : > { %v850_v57 = vsel %vm608_vm2, %v849_v55, -inf  ;;  %v1889_v56 = vld [vmem:[%s2674_s7] ss:$0 sm:$0xff] }
 0x58d   : > { %851 = vmax.xlane.f32.xlu1 %v850_v57 }
 0x59e   : > { %861 = vrot.lane.b32.xlu1 %v2426_v26, %s2249_s28 }
 0x5a2   : > { %1085 = vrot.lane.b32.xlu1 %v2426_v26, %s2250_s18  ;;  %s2255_s18 = smov 40  }
 0x5a6   : > { %1083 = vrot.lane.b32.xlu1 %v2426_v26, %s2251_s0  ;;  %s2624_s0 = scalar_lea.hbm %s2681_s14, %s1896_s1 }
 0x61a   : > { %v852_v58 = vpop.xlane.xlu1 %851 }
 0x61b   : > { %v853_v59 = vsub.f32 %v849_v55, %v852_v58 }
 0x61d   : > { %v854_v60 = vmul.f32 1.442695, %v853_v59 }
 0x61e   : > { %v862_v61 = vpop.permute.xlu1 %861 }
 0x61f   : > { %2163 = vpow2.f32 %v854_v60  ;;  %1977 = vmatpush3.msra.mxu0 %v862_v61 }
 0x620   : > { %1981 = vmatprep.subr.mxu0 %v2243_v13 }
 0x622   : > { %v1086_v8 = vpop.permute.xlu1 %1085 }
 0x626   : > { %v1084_v12 = vpop.permute.xlu1 %1083 }
 0x629   : > { %v2164_v62 = vpop.eup %2163 }
 0x62a   : > { %v856_v63 = vsel %vm608_vm2, %v2164_v62, 0.0 }
 0x62b   : > { %857 = vadd.xlane.f32.xlu0 %v856_v63 }
 0x641   : > { %1173 = vrot.lane.b32.xlu0 %v2426_v26, %s2252_s22  ;;  %s467_s22 = sand.u32 1, %s2231_s30  }
 0x642   : > { %s1782_s21 = scalar_lea.sflag [#allocation3], %s467_s22 }
 0x645   : > { %1325 = vrot.lane.b32.xlu0 %v2426_v26, %s2253_s20  ;;  %s1867_s20 = sshll.u32 %s467_s22, 3 }
 0x65a   : > { %v1079_v1 = vpop.f32.mrb[0].mxu1 }
 0x65b   : > { %v1990_v2 = vpop.f32.mrb[1].mxu1 }
 0x6b8   : > { %v858_v3 = vpop.xlane.xlu0 %857 }
 0x6b9   : > { %2165 = vrcp.f32 %v858_v3  ;;  %v1603_v3 = vld [vmem:[%s2677_s10 + $0x10] sm:$0xff] }
 0x6bc   : > { %v1174_v4 = vpop.permute.xlu0 %1173 }
 0x6bd   : > { %1997 = vmatpush3.msra.mxu1 %v1174_v4  ;;  %v1604_v4 = vld [vmem:[%s2677_s10 + $0x18] sm:$0xff] }
 0x6be   : > { %2006 = vmatprep.subr.mxu1 %v2243_v13 }
 0x6c0   : > { %v1326_v27 = vpop.permute.xlu0 %1325 }
 0x6c3   : > { %v2166_v5 = vpop.eup %2165 }
 0x6c4   : > { %v860_v6 = vmul.f32 %v2166_v5, %v2164_v62  ;;  %v2077_v5 = vpack.c.bf16 %v1604_v4, %v1603_v3 }
 0x6c6   : > { %1979 = vmatmul.mubr.msk.f32.vlgmr.msra.gmra.mrb[8].mxu0 %vm608_vm2, %v860_v6  ;;  %v1686_v6 = vld [vmem:[%s2679_s12] sm:$0xff] }
 0x6c7   : > { %1982 = vmatpush3.msra.mxu0 %v602_v7  ;;  %1983 = vmatprep.mubr.msk.f32.mxu0 %vm2242_vm1, %v2243_v13  ;;  %v1687_v7 = vld [vmem:[%s2679_s12 + $0x8] sm:$0xff] }
 0x6c8   : > { %1991 = vmatprep.subr.mxu0 %v2243_v13 }
 0x799   : > { %v933_v9 = vpop.f32.mrb[8].mxu0 }
 0x79a   : > { %v1980_v11 = vpop.f32.mrb[9].mxu0  ;;  %1984 = vmatmul.mubr.msk.f32.vlgmr.msra.gmra.mrb[10].mxu0 %vm608_vm2, %v933_v9  ;;  %v2080_v9 = vpack.c.bf16 %v1687_v7, %v1686_v6 }
 0x79b   : > { %1992 = vmatpush3.xpose.msk.msra.mxu0 %vm608_vm2, %v1086_v8  ;;  %1993 = vmatprep.mubr.msk.f32.mxu0 %vm2242_vm1, %v2243_v13  ;;  %v1688_v8 = vld [vmem:[%s2679_s12 + $0x10] sm:$0xff]  ;;  %v1689_v11 = vld [vmem:[%s2679_s12 + $0x18] sm:$0xff] }
 0x79c   : > { %2001 = vmatprep.subr.mxu0 %v2243_v13 }
 0x79e   : > { %1994 = vmatmul.mubr.msk.f32.vlgmr.msra.gmra.mrb[12].mxu0 %vm608_vm2, %v1084_v12  ;;  %v2083_v12 = vpack.c.bf16 %v1689_v11, %v1688_v8 }
 0x79f   : > { %2003 = vmatprep.mubr.msk.f32.mxu0 %vm2242_vm1, %v2243_v13  ;;  %2002 = vmatpush3.msra.mxu0 %v603_v32 }
 0x7a0   : > { %2011 = vmatprep.subr.mxu0 %v2243_v13 }
 0x86d   : > { %v1006_v14 = vpop.f32.mrb[10].mxu0 }
 0x86e   : > { %v1080_v15 = vadd.f32 %v1079_v1, %v1006_v14  ;;  %v1985_v16 = vpop.f32.mrb[11].mxu0  ;;  %v1601_v1 = vld [vmem:[%s2677_s10] sm:$0xff] }
 0x86f   : > { %v1690_v14 = vld [vmem:[%s2679_s12 + $0x20] sm:$0xff] }
 0x871   : > { %v1157_v17 = vpop.f32.mrb[12].mxu0 }
 0x872   : > { %v1161_v18 = vsel %vm600_vm4, -3.5355338e+08, %v1157_v17  ;;  %v1995_v19 = vpop.f32.mrb[13].mxu0  ;;  %v1692_v17 = vld [vmem:[%s2679_s12 + $0x30] sm:$0xff] }
 0x873   : > { %v1162_v20 = vsel %vm608_vm2, %v1161_v18, -inf }
 0x874   : > { %1163 = vmax.xlane.f32.xlu1 %v1162_v20  ;;  %v1694_v20 = vld [vmem:[%s2679_s12 + $0x40] sm:$0xff] }
 0x901   : > { %v1164_v21 = vpop.xlane.xlu1 %1163 }
 0x902   : > { %v1165_v22 = vsub.f32 %v1161_v18, %v1164_v21  ;;  %v1693_v18 = vld [vmem:[%s2679_s12 + $0x38] sm:$0xff]  ;;  %v1695_v21 = vld [vmem:[%s2679_s12 + $0x48] sm:$0xff] }
 0x903   : > { %v2089_v19 = vpack.c.bf16 %v1693_v18, %v1692_v17 }
 0x904   : > { %v1166_v23 = vmul.f32 1.442695, %v1165_v22  ;;  %v2092_v22 = vpack.c.bf16 %v1695_v21, %v1694_v20 }
 0x906   : > { %2167 = vpow2.f32 %v1166_v23  ;;  %v1696_v23 = vld [vmem:[%s2679_s12 + $0x50] sm:$0xff] }
 0x910   : > { %v2168_v24 = vpop.eup %2167 }
 0x911   : > { %v1168_v25 = vsel %vm608_vm2, %v2168_v24, 0.0 }
 0x912   : > { %1169 = vadd.xlane.f32.xlu0 %v1168_v25 }
 0x928   : > { %1323 = vrot.lane.b32.xlu0 %v2426_v26, %s2254_s27  ;;  %s469_s27 = scalar_lea.vmem [#allocation2], %s1867_s20  ;;  %s2256_s20 = smov [#allocation2]  }
 0x929   : > { %s1795_s26 = sshll.u32 %s469_s27, 4  ;;  %s2181_s25 = sshll.u32 %s2256_s20, 4  ;;  %s2626_s26 = int_to_ptr.vmem [resolvable:$true] %s1795_s26  ;;  %s2182_s25 = int_to_ptr.vmem [resolvable:$false] %s2181_s25 }
 0x92a   : > { %s2177_s17 = scalar_lea.vmem %s2626_s26, 128  ;;  %s2183_s2 = scalar_lea.vmem %s2182_s25, 256 }
 0x92b   : > { %p2178_p11 = scmp.ne.s32.totalorder %s2626_s26, %s2177_s17  ;;  %p2184_p0 = scmp.lt.s32.totalorder %s2626_s26, %s2182_s25 }
 0x92c   : > { %p2185_p1 = scmp.lt.s32.totalorder %s2183_s2, %s2177_s17 }
 0x92d   : > { %p2179_p12 = pnand %p2178_p11, %p2370_p5 }
 0x92e   : > { %p2186_p2 = por %p2185_p1, %p2184_p0 }
 0x92f   : > { %p2180_p13 = pneg %p2179_p12 }
 0x931   : > { %p2187_p3 = pnand %p2186_p2, %p2180_p13 }
 0x99f   : > { %v1170_v28 = vpop.xlane.xlu0 %1169 }
 0x9a0   : > { %2169 = vrcp.f32 %v1170_v28  ;;  %v1699_v28 = vld [vmem:[%s2679_s12 + $0x68] sm:$0xff] }
 0x9a3   : > { %v1324_v31 = vpop.permute.xlu0 %1323 }
 0x9aa   : > { %v2170_v29 = vpop.eup %2169 }
 0x9ab   : > { %v1172_v30 = vmul.f32 %v2170_v29, %v2168_v24  ;;  %v1697_v24 = vld [vmem:[%s2679_s12 + $0x58] sm:$0xff] }
 0x9ac   : > { %v2095_v25 = vpack.c.bf16 %v1697_v24, %v1696_v23 }
 0x9ad   : > { %1999 = vmatmul.mubr.msk.f32.vlgmr.msra.gmra.mrb[2].mxu1 %vm608_vm2, %v1172_v30 }
 0x9ae   : > { %2007 = vmatpush3.xpose.msk.msra.mxu1 %vm608_vm2, %v1326_v27  ;;  %2008 = vmatprep.mubr.msk.f32.mxu1 %vm2242_vm1, %v2243_v13  ;;  %v1698_v27 = vld [vmem:[%s2679_s12 + $0x60] sm:$0xff] }
 0x9af   : > { %2016 = vmatprep.subr.mxu1 %v2243_v13  ;;  %v2098_v29 = vpack.c.bf16 %v1699_v28, %v1698_v27 }
 0x9b1   : > { %2009 = vmatmul.mubr.msk.f32.vlgmr.msra.gmra.mrb[4].mxu1 %vm608_vm2, %v1324_v31 }
 0x9b2   : > { %2018 = vmatprep.mubr.msk.f32.mxu1 %vm2242_vm1, %v2243_v13  ;;  %2017 = vmatpush3.msra.mxu1 %v604_v36 }
 0x9b3   : > { %2079 = vmatprep.subr.bf16.mxu1 %v2241_v10 }
 0xa80   : > { %v1245_v33 = vpop.f32.mrb[2].mxu1 }
 0xa81   : > { %v2000_v34 = vpop.f32.mrb[3].mxu1  ;;  %2004 = vmatmul.mubr.msk.f32.vlgmr.msra.gmra.mrb[14].mxu0 %vm608_vm2, %v1245_v33 }
 0xa82   : > { %2013 = vmatprep.mubr.msk.f32.mxu0 %vm2242_vm1, %v2243_v13  ;;  %v1890_v34 = vld [vmem:[%s2675_s8] ss:$0 sm:$0xff] }
 0xa84   : > { %v1397_v35 = vpop.f32.mrb[4].mxu1 }
 0xa85   : > { %v1401_v37 = vsel %vm600_vm4, -3.5355338e+08, %v1397_v35  ;;  %v2010_v38 = vpop.f32.mrb[5].mxu1 }
 0xa86   : > { %v1402_v39 = vsel %vm608_vm2, %v1401_v37, -inf }
 0xa87   : > { %1403 = vmax.xlane.f32.xlu1 %v1402_v39 }
 0xa98   : > { %1413 = vrot.lane.b32.xlu1 %v2426_v26, %s2255_s18 }
 0xb14   : > { %v1404_v40 = vpop.xlane.xlu1 %1403 }
 0xb15   : > { %v1405_v41 = vsub.f32 %v1401_v37, %v1404_v40  ;;  %v1891_v37 = vld [vmem:[%s2676_s9] ss:$0 sm:$0xff]  ;;  %v1701_v40 = vld [vmem:[%s2679_s12 + $0x78] sm:$0xff] }
 0xb17   : > { %v1406_v42 = vmul.f32 1.442695, %v1405_v41 }
 0xb18   : > { %v1414_v43 = vpop.permute.xlu1 %1413 }
 0xb19   : > { %2171 = vpow2.f32 %v1406_v42  ;;  %2012 = vmatpush3.msra.mxu0 %v1414_v43  ;;  %v1892_v42 = vld [vmem:[%s2678_s11] ss:$0 sm:$0xff] }
 0xb1a   : > { %2073 = vmatprep.subr.bf16.mxu0 %v2241_v10 }
 0xb23   : > { %v2172_v44 = vpop.eup %2171 }
 0xb24   : > { %v1408_v45 = vsel %vm608_vm2, %v2172_v44, 0.0 }
 0xb25   : > { %1409 = vadd.xlane.f32.xlu0 %v1408_v45 }
 0xb54   : > { %v1318_v26 = vpop.f32.mrb[14].mxu0 }
 0xb55   : > { %v1322_v46 = vadd.f32 %v1318_v26, %v1080_v15  ;;  %v2005_v47 = vpop.f32.mrb[15].mxu0  ;;  %v1691_v15 = vld [vmem:[%s2679_s12 + $0x28] sm:$0xff]  ;;  %v1894_v26 = vld [vmem:[%s2680_s13] ss:$0 sm:$0xff] }
 0xb56   : > { %v2086_v16 = vpack.c.bf16 %v1691_v15, %v1690_v14 }
 0xbb2   : > { %v1410_v48 = vpop.xlane.xlu0 %1409 }
 0xbb3   : > { %2173 = vrcp.f32 %v1410_v48 }
 0xbbd   : > { %v2174_v49 = vpop.eup %2173 }
 0xbbe   : > { %v1412_v50 = vmul.f32 %v2174_v49, %v2172_v44 }
 0xbc0   : > { %2014 = vmatmul.mubr.msk.f32.vlgmr.msra.gmra.mrb[16].mxu0 %vm608_vm2, %v1412_v50 }
 0xbc1   : > { %2029 = vmatprep.mubr.msk.f32.mxu0 %vm2242_vm1, %v2243_v13 }
 0xc93   : > { %v1485_v51 = vpop.f32.mrb[16].mxu0 }
 0xc94   : > { %v2015_v52 = vpop.f32.mrb[17].mxu0  ;;  %2019 = vmatmul.mubr.msk.f32.vlgmr.msra.gmra.mrb[6].mxu1 %vm608_vm2, %v1485_v51 }
 0xc95   : > { %2064 = vmatprep.mubr.msk.f32.mxu1 %vm2242_vm1, %v2243_v13  ;;  %2081 = vmatpush3.bf16.msra.mxu1 %v2080_v9 }
 0xc96   : > { %2082 = vmatprep.subr.bf16.mxu1 %v2241_v10 }
 0xc99   : > { %2084 = vmatpush3.bf16.msra.mxu1 %v2083_v12 }
 0xc9a   : > { %2085 = vmatprep.subr.bf16.mxu1 %v2241_v10 }
 0xc9d   : > { %2087 = vmatpush3.bf16.msra.mxu1 %v2086_v16 }
 0xc9e   : > { %2088 = vmatprep.subr.bf16.mxu1 %v2241_v10 }
 0xca1   : > { %2090 = vmatpush3.bf16.msra.mxu1 %v2089_v19 }
 0xca2   : > { %2091 = vmatprep.subr.bf16.mxu1 %v2241_v10 }
 0xca5   : > { %2093 = vmatpush3.bf16.msra.mxu1 %v2092_v22 }
 0xca6   : > { %2094 = vmatprep.subr.bf16.mxu1 %v2241_v10 }
 0xca9   : > { %2096 = vmatpush3.bf16.msra.mxu1 %v2095_v25 }
 0xcaa   : > { %2097 = vmatprep.subr.bf16.mxu1 %v2241_v10 }
 0xcad   : > { %2099 = vmatpush3.bf16.msra.mxu1 %v2098_v29 }
 0xcae   : > { %2100 = vmatprep.subr.bf16.mxu1 %v2241_v10 }
 0xd67   : > { %v1558_v53 = vpop.f32.mrb[6].mxu1 }
 0xd68   : > { %v1562_v54 = vadd.f32 %v1558_v53, %v1322_v46  ;;  %v2020_v55 = vpop.f32.mrb[7].mxu1 }
 0xd6a   : > { %v1563_v57 = vadd.f32 %v1562_v54, %v2388_v0  ;;  %v1602_v0 = vld [vmem:[%s2677_s10 + $0x8] sm:$0xff] }
 0xd6b   : > { %v2074_v2 = vpack.c.bf16 %v1602_v0, %v1601_v1 }
 0xd6c   : > { %v2531_v58 = vadd.f32 %v1889_v56, %v1563_v57 }
 0xd6d   : > { %2075 = vmatpush3.bf16.msra.mxu0 %v2074_v2 }
 0xd6e   : > { %v1574_v59 = vsel %vm480_vm0, %v2531_v58, 0.0  ;;  %2076 = vmatprep.subr.bf16.mxu0 %v2241_v10  ;;  %v1700_v10 = vld [vmem:[%s2679_s12 + $0x70] sm:$0xff] }
 0xd6f   : > { %1575 = vadd.xlane.f32.xlu1 %v1574_v59  ;;  %v2101_v41 = vpack.c.bf16 %v1701_v40, %v1700_v10 }
 0xd71   : > { %2078 = vmatpush3.bf16.msra.mxu0 %v2077_v5  ;;  %2102 = vmatpush3.bf16.msra.mxu1 %v2101_v41 }
 0xdfc   : > { %v1576_v60 = vpop.xlane.xlu1 %1575 }
 0xdfd   : > { %v1577_v61 = vmul.f32 0.03125, %v1576_v60 }
 0xdff   : > { %v1578_v62 = vsub.f32 %v2531_v58, %v1577_v61 }
 0xe01   : > { %v1579_v13 = vmul.f32 %v1578_v62, %v1578_v62 }
 0xe03   : > { %v1580_v63 = vsel %vm480_vm0, %v1579_v13, 0.0 }
 0xe04   : > { %1581 = vadd.xlane.f32.xlu0 %v1580_v63 }
 0xe91   : > { %v1582_v30 = vpop.xlane.xlu0 %1581 }
 0xe92   : > { %v1583_v31 = vmul.f32 0.03125, %v1582_v30 }
 0xe94   : > { %v1584_v32 = vadd.f32 1e-05, %v1583_v31 }
 0xe96   : > { %2175 = vrsqrt.f32 %v1584_v32 }
 0xea0   : > { %v2176_v33 = vpop.eup %2175 }
 0xea1   : > { %v1586_v35 = vmul.f32 %v2176_v33, %v1578_v62 }
 0xea3   : > { %v1593_v38 = vmul.f32 %v1890_v34, %v1586_v35 }
 0xea5   : > { %v1600_v39 = vadd.f32 %v1891_v37, %v1593_v38 }
 0xea7   : > { %2030 = vmatmul.mubr.msk.f32.vlgmr.msra.gmra.mrb[18].mxu0 %vm480_vm0, %v1600_v39 }
 0xf7a   : > { %v1681_v43 = vpop.f32.mrb[18].mxu0 }
 0xf7b   : > { %v1682_v44 = vadd.f32 %v1892_v42, %v1681_v43  ;;  %v2031_v45 = vpop.f32.mrb[19].mxu0 }
 0xf7d   : > { %v1685_v36 = vmax.f32 %v1682_v44, 0.0 }
 0xf7f   : > { %2065 = vmatmul.mubr.f32.vlgmr.msra.gmra.mrb[8].mxu1 %v1685_v36 }
0x1052   : > { %v1775_v46 = vpop.f32.mrb[8].mxu1 }
0x1053   : > { %v1776_v47 = vadd.f32 %v1894_v26, %v1775_v46  ;;  %v2066_v48 = vpop.f32.mrb[9].mxu1 }
0x1055   : > { %v1779_v49 = vadd.f32 %v1776_v47, %v2531_v58 }
0x1057   : > { %1780 = vst.msk [vmem:[%s469_s27] sm:$0xff] %vm480_vm0, %v1779_v49 }
0x1058   : > { %2190 = shalt.err (!%p2187_p3)
}
0x1059   : > { %s2191_s22 = scalar_lea.hbm %s2624_s0, 128  ;;  %s2195_s28 = scalar_lea.hbm %s2681_s14, 256 }
0x105a   : > { %p2192_p4 = scmp.ne.s32.totalorder %s2624_s0, %s2191_s22  ;;  %p2196_p9 = scmp.lt.u32.totalorder %s2624_s0, %s2681_s14 }
0x105b   : > { %p2197_p10 = scmp.lt.u32.totalorder %s2195_s28, %s2191_s22  ;;  %p2199_p12 = scmp.lt.u32.totalorder %s2191_s22, %s2624_s0 }
0x105c   : > { %p2193_p7 = pnand %p2192_p4, %p2370_p5 }
0x105d   : > { %p2198_p11 = por %p2197_p10, %p2196_p9 }
0x105e   : > { %p2194_p8 = pneg %p2193_p7 }
0x105f   : > { %p2200_p13 = por %p2199_p12, %p2198_p11 }
0x1061   : > { %p2201_p0 = pnand %p2200_p13, %p2194_p8 }
0x1063   : > { %2204 = shalt.err (!%p2201_p0)
}
0x1064   : > { %2103 = dma.vmem_to_hbm [thread:$0]  (%p2370_p5), %s2626_s26, 128, %s2624_s0, %s1782_s21  }
0x1065 PF: > { %p2109_p1 = scmp.ge.s32.totalorder %s2239_s16, 2  ;;  %s1807_s2 = sand.u32 1, %s2227_s29  }
0x1066   : > { %s1808_s17 = scalar_lea.sflag [#allocation3], %s1807_s2 }
0x1067   : > { %p2106_p2 = pnand %p2109_p1, %p2374_p6 }
0x1069   : > { %2222 = dma.done.wait (!%p2106_p2), %s1808_s17, 128  }
0x106a   : > { %2224 = vsyncadd (!%p2106_p2), %s1808_s17, 4294967168  ;;  %s2691_s25 = sld [smem:[#allocation5_spill]]  ;;  %p24_p3 = scmp.ge.s32.totalorder %s2357_s19, 4  }
0x106b   : > { %s2692_s29 = smov %s2231_s30  ;;  %s2693_s30 = smov %s2235_s15 }
0x106c   : > { %s2695_s16 = smov %s2357_s19  ;;  %26 = sbr.rel (!%p24_p3) target bundleno = 7 (0x7), region = 114 }
0x1070   : > { %s2694_s15 = smov %s2691_s25 }
0x1073   :  { %1813 = vsyncpa [#allocation3], 1 }
0x1074   :  { %1815 = vsyncpa [#allocation3 + $0x1], 1 }

</bundles_post_ra>
